<compile_context>
chip_gen: v7x
topology: tpu7x:2x2x1
jax: 0.10.0
libtpu: 0.0.40
codegen_flags: <defaults>
</compile_context>

<pallas_src>
import functools

import jax
import jax.numpy as jnp
import numpy as np
from jax.experimental import pallas as pl
from jax.experimental.pallas import tpu as pltpu

EPS = 1e-6


def _round_up(x, m):
    return ((x + m - 1) // m) * m


def gat_edge_avg_kernel(h_ref, mtgt_ref, wfa_ref, bfa_ref, o_ref, acc_ref, *, do, eps):
    # h: [TE, 2*di], mtgt: [TN, TE] (bf16), wfa: [2*di, DP], bfa: [1, DP]
    # o: [TN, DP], acc: [TN, DP] f32 scratch (resident across the E axis)
    k = pl.program_id(1)

    @pl.when(k == 0)
    def _init():
        acc_ref[...] = jnp.zeros_like(acc_ref)

    h = h_ref[...]

    # Fused edge linear: ya[:, :do] = f(h) pre-activation, ya[:, do] = w(h),
    # ya[:, do+1:] = 0 (zero-padded weight/bias columns).
    ya = jnp.dot(h, wfa_ref[...], preferred_element_type=jnp.float32) + bfa_ref[...]

    a = ya[:, do:do + 1]                                   # [TE, 1]
    col = jax.lax.broadcasted_iota(jnp.int32, ya.shape, 1)  # [TE, DP]
    # cols < do : relu(f(h)) * a     (the numerator contribution)
    # col == do : a                  (the a_sum contribution)
    # cols > do : relu(0) * a == 0   (padding)
    contrib = jnp.where(col == do, ya, jnp.maximum(ya, 0.0) * a)

    # Fused aggregation: Mtgt_tile @ [y*a | a | 0], accumulated over E tiles.
    m = mtgt_ref[...].astype(jnp.float32)                  # bf16 in HBM, exact 0/1
    acc_ref[...] += jnp.dot(m, contrib, preferred_element_type=jnp.float32)

    @pl.when(k == pl.num_programs(1) - 1)
    def _finalize():
        acc = acc_ref[...]
        a_sum = acc[:, do:do + 1] + eps
        inv = pl.reciprocal(a_sum, approx=False)
        o_ref[...] = (acc * inv).astype(o_ref.dtype)


def gat_layer_edge_average(x, adj, src, tgt, Msrc, Mtgt, Wf, bf, Ww, bw, eps=EPS):
    """Pallas-backed forward pass of GATLayerEdgeAverage.

    adj and Msrc are accepted for signature fidelity but (like in the PyTorch
    module's forward) are not used.
    """
    del adj, Msrc
    N, di = x.shape
    E = int(src.shape[0])
    do = Wf.shape[1]
    two_di = 2 * di

    # ---- fused, lane-dense parameters -------------------------------------
    DP = _round_up(do + 1, 128)                       # lane-dense output width
    Wfa = jnp.zeros((two_di, DP), jnp.float32)
    Wfa = Wfa.at[:, :do].set(Wf.astype(jnp.float32))
    Wfa = Wfa.at[:, do].set(Ww.reshape(two_di).astype(jnp.float32))
    bfa = jnp.zeros((1, DP), jnp.float32)
    bfa = bfa.at[0, :do].set(bf.reshape(do).astype(jnp.float32))
    bfa = bfa.at[0, do].set(jnp.reshape(bw, ()).astype(jnp.float32))

    # ---- tile sizes (sized well under v7x's 64 MiB VMEM) -------------------
    TN = 256 if N >= 256 else _round_up(N, 8)
    Np = _round_up(N, TN)
    TE = 512 if E >= 512 else _round_up(max(E, 1), 128)
    Ep = _round_up(E, TE)

    # ---- glue: gather endpoints, concat, pad ------------------------------
    h = jnp.concatenate([x[src], x[tgt]], axis=1).astype(jnp.float32)   # [E, 2*di]
    h = jnp.pad(h, ((0, Ep - E), (0, 0)))
    # Padded edge columns of Mtgt are zero, so padded edges contribute nothing.
    mtgt_p = jnp.pad(Mtgt.astype(jnp.float32), ((0, Np - N), (0, Ep - E)))
    mtgt_p = mtgt_p.astype(jnp.bfloat16)               # exact for 0/1, halves HBM bytes

    kernel = functools.partial(gat_edge_avg_kernel, do=do, eps=float(eps))

    out = pl.pallas_call(
        kernel,
        out_shape=jax.ShapeDtypeStruct((Np, DP), jnp.float32),
        grid_spec=pltpu.PrefetchScalarGridSpec(
            num_scalar_prefetch=0,
            grid=(Np // TN, Ep // TE),                 # (N tiles "parallel", E tiles reduce)
            in_specs=[
                pl.BlockSpec((TE, two_di), lambda i, k: (k, 0)),   # h
                pl.BlockSpec((TN, TE), lambda i, k: (i, k)),       # Mtgt (bf16)
                pl.BlockSpec((two_di, DP), lambda i, k: (0, 0)),   # fused weight
                pl.BlockSpec((1, DP), lambda i, k: (0, 0)),        # fused bias
            ],
            out_specs=pl.BlockSpec((TN, DP), lambda i, k: (i, 0)),
            scratch_shapes=[pltpu.VMEM((TN, DP), jnp.float32)],
        ),
        compiler_params=pltpu.CompilerParams(
            dimension_semantics=("parallel", "arbitrary"),
            vmem_limit_bytes=32 * 1024 * 1024,
        ),
    )(h, mtgt_p, Wfa, bfa)

    return out[:N, :do]


# ----------------------------- test harness --------------------------------

def _xavier_uniform(key, shape):
    # shape = (fan_out, fan_in) like nn.Linear.weight
    fan_out, fan_in = shape
    limit = float(np.sqrt(6.0 / (fan_in + fan_out)))
    return jax.random.uniform(key, shape, minval=-limit, maxval=limit,
                              dtype=jnp.float32)


def _linear_bias(key, fan_in, fan_out):
    # nn.Linear default bias init: U(-1/sqrt(fan_in), 1/sqrt(fan_in))
    bound = 1.0 / float(np.sqrt(fan_in))
    return jax.random.uniform(key, (fan_out,), minval=-bound, maxval=bound,
                              dtype=jnp.float32)


def _reference(x, src, tgt, Mtgt, Wf, bf, Ww, bw):
    h = jnp.concatenate([x[src], x[tgt]], axis=1)
    y = jax.nn.relu(h @ Wf + bf)
    a = h @ Ww + bw
    a_sum = Mtgt @ a + EPS
    return (Mtgt @ (y * a)) / a_sum


if __name__ == "__main__":
    # Small synthetic graph: N nodes, E directed edges, di -> do features.
    N, E, di, do = 8, 16, 16, 32

    key = jax.random.PRNGKey(0)
    kx, ksrc, ktgt, kwf, kbf, kww, kbw = jax.random.split(key, 7)

    x = jax.random.normal(kx, (N, di), dtype=jnp.float32)
    src = jax.random.randint(ksrc, (E,), 0, N)
    tgt = jax.random.randint(ktgt, (E,), 0, N)

    # Dense incidence matrices (one-hot rows over nodes).
    Msrc = (jnp.arange(N)[:, None] == src[None, :]).astype(jnp.float32)  # [N, E]
    Mtgt = (jnp.arange(N)[:, None] == tgt[None, :]).astype(jnp.float32)  # [N, E]
    adj = (Msrc @ Mtgt.T > 0).astype(jnp.float32)                        # [N, N] (unused)

    # Parameters: f = Linear(2*di, do), w = Linear(2*di, 1), xavier-uniform weights.
    fw = _xavier_uniform(kwf, (do, 2 * di))       # torch layout [do, 2*di]
    wb = _xavier_uniform(kww, (1, 2 * di))        # torch layout [1, 2*di]
    Wf = fw.T                                     # [2*di, do] kernel layout
    Ww = wb.T                                     # [2*di, 1]
    bf = _linear_bias(kbf, 2 * di, do)            # [do]
    bw = _linear_bias(kbw, 2 * di, 1)             # [1]

    out = gat_layer_edge_average(x, adj, src, tgt, Msrc, Mtgt, Wf, bf, Ww, bw)
    out = jax.block_until_ready(out)

    ref = _reference(x, src, tgt, Mtgt, Wf, bf, Ww, bw)
    np.testing.assert_allclose(np.asarray(out), np.asarray(ref), rtol=1e-5, atol=1e-5)
    # Mirrors the torch.isnan assert in the PyTorch forward (done host-side).
    assert not bool(jnp.isnan(out).any())

    print("KERNEL_OK")
</pallas_src>

<mosaic_0001>
module attributes {stable_mosaic.version = 11 : i64} {
  func.func @gat_edge_avg_kernel(%arg0: i32, %arg1: i32, %arg2: memref<128x32xf32, #tpu.memory_space<vmem>>, %arg3: memref<8x128xbf16, #tpu.memory_space<vmem>>, %arg4: memref<32x128xf32, #tpu.memory_space<vmem>>, %arg5: memref<1x128xf32, #tpu.memory_space<vmem>>, %arg6: memref<8x128xf32, #tpu.memory_space<vmem>>, %arg7: memref<8x128xf32, #tpu.memory_space<vmem>>) attributes {dimension_semantics = [#tpu.dimension_semantics<parallel>, #tpu.dimension_semantics<arbitrary>], iteration_bounds = array<i64: 1, 1>, scalar_prefetch = 0 : i64, scratch_operands = 1 : i64, tpu.core_type = #tpu.core_type<tc>, window_params = [{transform_indices = @transform_0, window_bounds = array<i64: 128, 32>}, {transform_indices = @transform_1, window_bounds = array<i64: 8, 128>}, {pipeline_mode = #tpu.pipeline_mode<synchronous>, transform_indices = @transform_2, window_bounds = array<i64: 32, 128>}, {pipeline_mode = #tpu.pipeline_mode<synchronous>, transform_indices = @transform_3, window_bounds = array<i64: 1, 128>}, {transform_indices = @transform_4, window_bounds = array<i64: 8, 128>}]} {
    %c0_i32 = arith.constant 0 : i32
    %0 = arith.cmpi eq, %arg1, %c0_i32 : i32
    %1 = arith.extui %0 : i1 to i32
    %c0_i32_0 = arith.constant 0 : i32
    %2 = arith.cmpi ne, %1, %c0_i32_0 : i32
    scf.if %2 {
      %cst_16 = arith.constant 0.000000e+00 : f32
      %27 = vector.broadcast %cst_16 : f32 to vector<8x128xf32>
      %c0_17 = arith.constant 0 : index
      %c0_18 = arith.constant 0 : index
      %28 = vector.load %arg7[%c0_17, %c0_18] : memref<8x128xf32, #tpu.memory_space<vmem>>, vector<8x128xf32>
      tpu.vector_store %arg7[%c0_17, %c0_18], %27 {strides = array<i32>} : memref<8x128xf32, #tpu.memory_space<vmem>>, vector<8x128xf32>,
    } else {
    }
    %c0 = arith.constant 0 : index
    %c0_1 = arith.constant 0 : index
    %3 = vector.load %arg2[%c0, %c0_1] : memref<128x32xf32, #tpu.memory_space<vmem>>, vector<128x32xf32>
    %c0_2 = arith.constant 0 : index
    %c0_3 = arith.constant 0 : index
    %4 = vector.load %arg4[%c0_2, %c0_3] : memref<32x128xf32, #tpu.memory_space<vmem>>, vector<32x128xf32>
    %cst = arith.constant dense<0.000000e+00> : vector<128x128xf32>
    %5 = tpu.matmul %3, %4, %cst {dimension_numbers = #tpu.dot_dimension_numbers<[1], [0], [0], [1], [0, 0, 1, 1], [], []>} : vector<128x32xf32>, vector<32x128xf32>, vector<128x128xf32> -> vector<128x128xf32>
    %c0_4 = arith.constant 0 : index
    %c0_5 = arith.constant 0 : index
    %6 = vector.load %arg5[%c0_4, %c0_5] : memref<1x128xf32, #tpu.memory_space<vmem>>, vector<1x128xf32>
    %7 = vector.broadcast %6 : vector<1x128xf32> to vector<128x128xf32>
    %8 = arith.addf %5, %7 : vector<128x128xf32>
    %9 = vector.extract_strided_slice %8 {offsets = [0, 32], sizes = [128, 1], strides = [1, 1]} : vector<128x128xf32> to vector<128x1xf32>
    %10 = tpu.iota {dimensions = array<i32: 1>} : vector<128x128xi32>
    %c32_i32 = arith.constant 32 : i32
    %11 = vector.broadcast %c32_i32 : i32 to vector<128x128xi32>
    %12 = arith.cmpi eq, %10, %11 : vector<128x128xi32>
    %cst_6 = arith.constant 0.000000e+00 : f32
    %13 = vector.broadcast %cst_6 : f32 to vector<128x128xf32>
    %14 = arith.maximumf %8, %13 : vector<128x128xf32>
    %15 = vector.broadcast %9 : vector<128x1xf32> to vector<128x128xf32>
    %16 = arith.mulf %14, %15 : vector<128x128xf32>
    %17 = arith.select %12, %8, %16 : vector<128x128xi1>, vector<128x128xf32>
    %c0_7 = arith.constant 0 : index
    %c0_8 = arith.constant 0 : index
    %18 = vector.load %arg3[%c0_7, %c0_8] : memref<8x128xbf16, #tpu.memory_space<vmem>>, vector<8x128xbf16>
    %19 = arith.extf %18 : vector<8x128xbf16> to vector<8x128xf32>
    %c0_9 = arith.constant 0 : index
    %c0_10 = arith.constant 0 : index
    %20 = vector.load %arg7[%c0_9, %c0_10] : memref<8x128xf32, #tpu.memory_space<vmem>>, vector<8x128xf32>
    %cst_11 = arith.constant dense<0.000000e+00> : vector<8x128xf32>
    %21 = tpu.matmul %19, %17, %cst_11 {dimension_numbers = #tpu.dot_dimension_numbers<[1], [0], [0], [1], [0, 0, 1, 1], [], []>} : vector<8x128xf32>, vector<128x128xf32>, vector<8x128xf32> -> vector<8x128xf32>
    %22 = arith.addf %20, %21 : vector<8x128xf32>
    %c0_12 = arith.constant 0 : index
    %c0_13 = arith.constant 0 : index
    %23 = vector.load %arg7[%c0_12, %c0_13] : memref<8x128xf32, #tpu.memory_space<vmem>>, vector<8x128xf32>
    tpu.vector_store %arg7[%c0_12, %c0_13], %22 {strides = array<i32>} : memref<8x128xf32, #tpu.memory_space<vmem>>, vector<8x128xf32>,
    %c0_i32_14 = arith.constant 0 : i32
    %24 = arith.cmpi eq, %arg1, %c0_i32_14 : i32
    %25 = arith.extui %24 : i1 to i32
    %c0_i32_15 = arith.constant 0 : i32
    %26 = arith.cmpi ne, %25, %c0_i32_15 : i32
    scf.if %26 {
      %c0_16 = arith.constant 0 : index
      %c0_17 = arith.constant 0 : index
      %27 = vector.load %arg7[%c0_16, %c0_17] : memref<8x128xf32, #tpu.memory_space<vmem>>, vector<8x128xf32>
      %28 = vector.extract_strided_slice %27 {offsets = [0, 32], sizes = [8, 1], strides = [1, 1]} : vector<8x128xf32> to vector<8x1xf32>
      %cst_18 = arith.constant 9.99999997E-7 : f32
      %29 = vector.broadcast %cst_18 : f32 to vector<8x1xf32>
      %30 = arith.addf %28, %29 : vector<8x1xf32>
      %31 = tpu.reciprocal %30 : vector<8x1xf32> -> vector<8x1xf32>
      %32 = vector.broadcast %31 : vector<8x1xf32> to vector<8x128xf32>
      %33 = arith.mulf %27, %32 : vector<8x128xf32>
      %c0_19 = arith.constant 0 : index
      %c0_20 = arith.constant 0 : index
      %34 = vector.load %arg6[%c0_19, %c0_20] : memref<8x128xf32, #tpu.memory_space<vmem>>, vector<8x128xf32>
      tpu.vector_store %arg6[%c0_19, %c0_20], %33 {strides = array<i32>} : memref<8x128xf32, #tpu.memory_space<vmem>>, vector<8x128xf32>,
    } else {
    }
    return
  }
  func.func @transform_0(%arg0: i32, %arg1: i32) -> (i32, i32) {
    %c0_i32 = arith.constant 0 : i32
    %c0_i32_0 = arith.constant 0 : i32
    return %arg1, %c0_i32 : i32, i32
  }
  func.func @transform_1(%arg0: i32, %arg1: i32) -> (i32, i32) {
    %c0_i32 = arith.constant 0 : i32
    return %arg0, %arg1 : i32, i32
  }
  func.func @transform_2(%arg0: i32, %arg1: i32) -> (i32, i32) {
    %c0_i32 = arith.constant 0 : i32
    %c0_i32_0 = arith.constant 0 : i32
    %c0_i32_1 = arith.constant 0 : i32
    return %c0_i32, %c0_i32_0 : i32, i32
  }
  func.func @transform_3(%arg0: i32, %arg1: i32) -> (i32, i32) {
    %c0_i32 = arith.constant 0 : i32
    %c0_i32_0 = arith.constant 0 : i32
    %c0_i32_1 = arith.constant 0 : i32
    return %c0_i32, %c0_i32_0 : i32, i32
  }
  func.func @transform_4(%arg0: i32, %arg1: i32) -> (i32, i32) {
    %c0_i32 = arith.constant 0 : i32
    %c0_i32_0 = arith.constant 0 : i32
    return %arg0, %c0_i32 : i32, i32
  }
}

</mosaic_0001>

<bundles_post_ra>
// kernel: tpu_custom_call.1
= control target key start
LH: loop header
LB: loop body
LE: loop exit
PB: predicated region body
PF: predicated region fallthrough
CT: control target
= control target key end

     0   :  { %vm50_vm0 = vcmask 261120   ;;  %s905_s0 = inlined_call_operand.vmem [shape: f32[128,32], index: 0, kind: input, shape index: {}]   ;;  %s906_s1 = inlined_call_operand.vmem [shape: bf16[8,128], index: 1, kind: input, shape index: {}]   ;;  %s907_s2 = inlined_call_operand.vmem [shape: f32[32,128], index: 2, kind: input, shape index: {}]   ;;  %s908_s3 = inlined_call_operand.vmem [shape: f32[1,128], index: 3, kind: input, shape index: {}]   ;;  %s909_s4 = inlined_call_operand.hbm [shape: f32[8,128], index: 4, kind: output, shape index: {}]  }
   0x1   :  { %v39_v0 = vld [vmem:[%s907_s2] sm:$0xff]  ;;  %v40_v1 = vld [vmem:[%s907_s2 + $0x8] sm:$0xff]  ;;  %v41_v2 = vld [vmem:[%s907_s2 + $0x10] sm:$0xff] }
   0x2   :  { %v598_v3 = vpack.c.bf16 %v40_v1, %v39_v0  ;;  %v42_v4 = vld [vmem:[%s907_s2 + $0x18] sm:$0xff]  ;;  %v23_v5 = vld [vmem:[%s905_s0] sm:$0xff] }
   0x3   :  { %v602_v6 = vpack.c.bf16 %v42_v4, %v41_v2  ;;  %539 = vmatprep.mubr.msk.f32.mxu0 %vm50_vm0, %v23_v5 }
   0x4   :  { %599 = vmatprep.subr.bf16.mxu0 %v598_v3 }
   0x5   :  { %601 = vmatpush3.bf16.msra.mxu0 %v598_v3 }
   0x6   :  { %603 = vmatprep.subr.bf16.mxu0 %v602_v6 }
   0x7   :  { %9 = vsyncpa [#allocation4], 0  ;;  %v24_v7 = vld [vmem:[%s905_s0 + $0x8] sm:$0xff]  ;;  %v25_v8 = vld [vmem:[%s905_s0 + $0x10] sm:$0xff]  ;;  %v663_v22 = vmov 32   ;;  %v664_v37 = vmov 0.0|0.0   ;;  %v244_v58 = vlaneseq }
   0x8   :  { %v26_v9 = vld [vmem:[%s905_s0 + $0x18] sm:$0xff]  ;;  %v27_v10 = vld [vmem:[%s905_s0 + $0x20] sm:$0xff]  ;;  %v28_v11 = vld [vmem:[%s905_s0 + $0x28] sm:$0xff]  ;;  %635 = vset.pattern.permute.xlu0 %v663_v22  ;;  %636 = vset.pattern.permute.xlu1 %v663_v22  ;;  %vm665_vm1 = vmmov 0   ;;  %v666_v57 = vmov 0.0   ;;  %s667_s29 = smov [#allocation3]  }
   0x9   :  { %605 = vmatpush3.bf16.msra.mxu0 %v602_v6  ;;  %v29_v12 = vld [vmem:[%s905_s0 + $0x30] sm:$0xff]  ;;  %v30_v13 = vld [vmem:[%s905_s0 + $0x38] sm:$0xff]  ;;  %v31_v14 = vld [vmem:[%s905_s0 + $0x40] sm:$0xff]  ;;  %606 = vmatprep.subr.bf16.mxu1 %v664_v37  ;;  %v818_v60 = vand.u32 127, %v244_v58  ;;  %s469_s30 = sshll.u32 %s667_s29, 4  ;;  %s470_s30 = int_to_ptr.vmem [resolvable:$true] %s469_s30 }
   0xa   :  { %v32_v15 = vld [vmem:[%s905_s0 + $0x48] sm:$0xff]  ;;  %v33_v16 = vld [vmem:[%s905_s0 + $0x50] sm:$0xff]  ;;  %v34_v17 = vld [vmem:[%s905_s0 + $0x58] sm:$0xff]  ;;  %595 = vmatprep.mubr.msk.f32.mxu1 %vm665_vm1, %v666_v57  ;;  %s639_s5 = scalar_lea.vmem %s470_s30, 128  ;;  %p644_p1 = scmp.lt.s32.totalorder %s470_s30, %s470_s30 }
   0xb   :  { %v35_v18 = vld [vmem:[%s905_s0 + $0x60] sm:$0xff]  ;;  %v36_v19 = vld [vmem:[%s905_s0 + $0x68] sm:$0xff]  ;;  %v37_v20 = vld [vmem:[%s905_s0 + $0x70] sm:$0xff]  ;;  %vm246_vm2 = vcmp.eq.s32.totalorder %v818_v60, 32  ;;  %p640_p0 = scmp.ne.s32.totalorder %s470_s30, %s639_s5  ;;  %p645_p2 = scmp.lt.s32.totalorder %s639_s5, %s639_s5 }
   0xc   :  { %540 = vmatmul.mubr.msk.f32.vlgmr.msra.gmra.mrb[0].mxu0 %vm50_vm0, %v24_v7  ;;  %v38_v21 = vld [vmem:[%s905_s0 + $0x78] sm:$0xff]  ;;  %v477_v23 = vld [vmem:[%s908_s3] ss:$0 sm:$0xff] }
   0xd   :  { %542 = vmatprep.mubr.msk.f32.mxu0 %vm50_vm0, %v25_v8  ;;  %p646_p3 = por %p645_p2, %p644_p1 }
   0xf   :  { %p647_p4 = pnand %p646_p3, %p640_p0 }
  0x10   :  { %543 = vmatmul.mubr.msk.f32.gmra.mrb[2].mxu0 %vm50_vm0, %v26_v9 }
  0x11   :  { %545 = vmatprep.mubr.msk.f32.mxu0 %vm50_vm0, %v27_v10 }
  0x14   :  { %546 = vmatmul.mubr.msk.f32.gmra.mrb[4].mxu0 %vm50_vm0, %v28_v11 }
  0x15   :  { %548 = vmatprep.mubr.msk.f32.mxu0 %vm50_vm0, %v29_v12 }
  0x18   :  { %549 = vmatmul.mubr.msk.f32.gmra.mrb[6].mxu0 %vm50_vm0, %v30_v13 }
  0x19   :  { %551 = vmatprep.mubr.msk.f32.mxu0 %vm50_vm0, %v31_v14 }
  0x1c   :  { %552 = vmatmul.mubr.msk.f32.gmra.mrb[8].mxu0 %vm50_vm0, %v32_v15 }
  0x1d   :  { %554 = vmatprep.mubr.msk.f32.mxu0 %vm50_vm0, %v33_v16 }
  0x20   :  { %555 = vmatmul.mubr.msk.f32.gmra.mrb[10].mxu0 %vm50_vm0, %v34_v17 }
  0x21   :  { %557 = vmatprep.mubr.msk.f32.mxu0 %vm50_vm0, %v35_v18 }
  0x24   :  { %558 = vmatmul.mubr.msk.f32.gmra.mrb[12].mxu0 %vm50_vm0, %v36_v19 }
  0x25   :  { %560 = vmatprep.mubr.msk.f32.mxu0 %vm50_vm0, %v37_v20 }
  0x28   :  { %561 = vmatmul.mubr.msk.f32.gmra.mrb[14].mxu0 %vm50_vm0, %v38_v21 }
  0xdf   :  { %v541_v24 = vpop.f32.mrb[0].mxu0 }
  0xe0   :  { %v165_v25 = vpop.f32.mrb[1].mxu0  ;;  %v171_v30 = vadd.f32 %v541_v24, %v477_v23 }
  0xe1   :  { %v772_v26 = vadd.f32 %v477_v23, %v165_v25 }
  0xe2   :  { %v248_v0 = vmax.f32 %v171_v30, 0.0 }
  0xe3   :  { %v544_v27 = vpop.f32.mrb[2].mxu0  ;;  %265 = vperm.xlu0 %635, %v772_v26   ;;  %v247_v61 = vmax.f32 %v772_v26, 0.0 }
  0xe4   :  { %v775_v28 = vadd.f32 %v544_v27, %v477_v23  ;;  %v175_v29 = vpop.f32.mrb[3].mxu0 }
  0xe5   :  { %v778_v32 = vadd.f32 %v477_v23, %v175_v29 }
  0xe6   :  { %280 = vperm.xlu1 %636, %v775_v28   ;;  %v250_v1 = vmax.f32 %v775_v28, 0.0 }
  0xe7   :  { %v547_v31 = vpop.f32.mrb[4].mxu0  ;;  %270 = vperm.xlu0 %635, %v171_v30   ;;  %v249_v5 = vmax.f32 %v778_v32, 0.0 }
  0xe8   :  { %v185_v33 = vpop.f32.mrb[5].mxu0  ;;  %v782_v35 = vadd.f32 %v547_v31, %v477_v23 }
  0xe9   :  { %v780_v34 = vadd.f32 %v477_v23, %v185_v33 }
  0xea   :  { %275 = vperm.xlu1 %636, %v778_v32   ;;  %v252_v14 = vmax.f32 %v782_v35, 0.0 }
  0xeb   :  { %v550_v36 = vpop.f32.mrb[6].mxu0  ;;  %285 = vperm.xlu0 %635, %v780_v34   ;;  %v251_v10 = vmax.f32 %v780_v34, 0.0 }
  0xec   :  { %v195_v38 = vpop.f32.mrb[7].mxu0  ;;  %v789_v40 = vadd.f32 %v550_v36, %v477_v23 }
  0xed   :  { %v787_v39 = vadd.f32 %v477_v23, %v195_v38 }
  0xee   :  { %290 = vperm.xlu1 %636, %v782_v35  }
  0xef   :  { %v553_v41 = vpop.f32.mrb[8].mxu0  ;;  %295 = vperm.xlu0 %635, %v787_v39   ;;  %v253_v20 = vmax.f32 %v787_v39, 0.0 }
  0xf0   :  { %v205_v42 = vpop.f32.mrb[9].mxu0  ;;  %v795_v44 = vadd.f32 %v553_v41, %v477_v23 }
  0xf1   :  { %v793_v43 = vadd.f32 %v477_v23, %v205_v42 }
  0xf2   :  { %300 = vperm.xlu1 %636, %v789_v40  }
  0xf3   :  { %v556_v45 = vpop.f32.mrb[10].mxu0  ;;  %305 = vperm.xlu0 %635, %v793_v43   ;;  %v255_v29 = vmax.f32 %v793_v43, 0.0 }
  0xf4   :  { %v215_v46 = vpop.f32.mrb[11].mxu0  ;;  %v801_v48 = vadd.f32 %v556_v45, %v477_v23 }
  0xf5   :  { %v799_v47 = vadd.f32 %v477_v23, %v215_v46 }
  0xf6   :  { %310 = vperm.xlu1 %636, %v795_v44   ;;  %v258_v46 = vmax.f32 %v801_v48, 0.0 }
  0xf7   :  { %v559_v49 = vpop.f32.mrb[12].mxu0  ;;  %315 = vperm.xlu0 %635, %v799_v47   ;;  %v257_v41 = vmax.f32 %v799_v47, 0.0 }
  0xf8   :  { %v225_v50 = vpop.f32.mrb[13].mxu0  ;;  %v807_v52 = vadd.f32 %v559_v49, %v477_v23 }
  0xf9   :  { %v805_v51 = vadd.f32 %v477_v23, %v225_v50 }
  0xfa   :  { %320 = vperm.xlu1 %636, %v801_v48  }
  0xfb   :  { %v562_v53 = vpop.f32.mrb[14].mxu0  ;;  %325 = vperm.xlu0 %635, %v805_v51  }
  0xfc   :  { %v235_v54 = vpop.f32.mrb[15].mxu0  ;;  %v813_v56 = vadd.f32 %v562_v53, %v477_v23 }
  0xfd   :  { %v811_v55 = vadd.f32 %v477_v23, %v235_v54  ;;  %v254_v23 = vmax.f32 %v789_v40, 0.0  ;;  %v259_v54 = vmax.f32 %v805_v51, 0.0 }
  0xfe   :  { %330 = vperm.xlu1 %636, %v807_v52  }
  0xff   :  { %335 = vperm.xlu0 %635, %v811_v55  }
 0x102   :  { %340 = vperm.xlu1 %636, %v813_v56  }
 0x162   :  { %v266_v59 = vpop.permute.xlu0 %265 }
 0x163   :  { %v343_v62 = vmul.f32 %v266_v59, %v247_v61  ;;  %v260_v59 = vmax.f32 %v807_v52, 0.0 }
 0x165   :  { %v281_v63 = vpop.permute.xlu1 %280  ;;  %v359_v7 = vsel %vm246_vm2, %v772_v26, %v343_v62 }
 0x166   :  { %v271_v2 = vpop.permute.xlu0 %270  ;;  %v346_v4 = vmul.f32 %v281_v63, %v250_v1 }
 0x167   :  { %v344_v3 = vmul.f32 %v271_v2, %v248_v0  ;;  %v261_v0 = vmax.f32 %v811_v55, 0.0 }
 0x168   :  { %v362_v16 = vsel %vm246_vm2, %v775_v28, %v346_v4 }
 0x169   :  { %v276_v6 = vpop.permute.xlu1 %275  ;;  %v360_v8 = vsel %vm246_vm2, %v171_v30, %v344_v3  ;;  %v262_v3 = vmax.f32 %v813_v56, 0.0 }
 0x16a   :  { %v345_v9 = vmul.f32 %v276_v6, %v249_v5  ;;  %v286_v11 = vpop.permute.xlu0 %285  ;;  %v607_v12 = vpack.c.bf16 %v360_v8, %v359_v7 }
 0x16b   :  { %v347_v13 = vmul.f32 %v286_v11, %v251_v10 }
 0x16c   :  { %608 = vmatpush3.bf16.msra.mxu1 %v607_v12  ;;  %v361_v15 = vsel %vm246_vm2, %v778_v32, %v345_v9  ;;  %v256_v32 = vmax.f32 %v795_v44, 0.0 }
 0x16d   :  { %v291_v17 = vpop.permute.xlu1 %290  ;;  %609 = vmatprep.subr.bf16.mxu1 %v664_v37  ;;  %v610_v18 = vpack.c.bf16 %v362_v16, %v361_v15  ;;  %v363_v24 = vsel %vm246_vm2, %v780_v34, %v347_v13 }
 0x16e   :  { %v348_v19 = vmul.f32 %v291_v17, %v252_v14  ;;  %v296_v21 = vpop.permute.xlu0 %295 }
 0x16f   :  { %v349_v22 = vmul.f32 %v296_v21, %v253_v20 }
 0x170   :  { %611 = vmatpush3.bf16.msra.mxu1 %v610_v18  ;;  %v364_v25 = vsel %vm246_vm2, %v782_v35, %v348_v19 }
 0x171   :  { %v301_v26 = vpop.permute.xlu1 %300  ;;  %612 = vmatprep.subr.bf16.mxu1 %v664_v37  ;;  %v613_v27 = vpack.c.bf16 %v364_v25, %v363_v24  ;;  %v365_v33 = vsel %vm246_vm2, %v787_v39, %v349_v22 }
 0x172   :  { %v350_v28 = vmul.f32 %v301_v26, %v254_v23  ;;  %v306_v30 = vpop.permute.xlu0 %305 }
 0x173   :  { %v351_v31 = vmul.f32 %v306_v30, %v255_v29 }
 0x174   :  { %614 = vmatpush3.bf16.msra.mxu1 %v613_v27  ;;  %v366_v34 = vsel %vm246_vm2, %v789_v40, %v350_v28 }
 0x175   :  { %v311_v35 = vpop.permute.xlu1 %310  ;;  %615 = vmatprep.subr.bf16.mxu1 %v664_v37  ;;  %v616_v36 = vpack.c.bf16 %v366_v34, %v365_v33  ;;  %v367_v39 = vsel %vm246_vm2, %v793_v43, %v351_v31 }
 0x176   :  { %v352_v38 = vmul.f32 %v311_v35, %v256_v32  ;;  %v316_v42 = vpop.permute.xlu0 %315 }
 0x177   :  { %v353_v45 = vmul.f32 %v316_v42, %v257_v41 }
 0x178   :  { %617 = vmatpush3.bf16.msra.mxu1 %v616_v36  ;;  %v368_v40 = vsel %vm246_vm2, %v795_v44, %v352_v38 }
 0x179   :  { %v321_v49 = vpop.permute.xlu1 %320  ;;  %618 = vmatprep.subr.bf16.mxu1 %v664_v37  ;;  %v619_v50 = vpack.c.bf16 %v368_v40, %v367_v39  ;;  %v369_v43 = vsel %vm246_vm2, %v799_v47, %v353_v45 }
 0x17a   :  { %v354_v53 = vmul.f32 %v321_v49, %v258_v46  ;;  %v326_v57 = vpop.permute.xlu0 %325 }
 0x17b   :  { %v355_v58 = vmul.f32 %v326_v57, %v259_v54 }
 0x17c   :  { %620 = vmatpush3.bf16.msra.mxu1 %v619_v50  ;;  %v370_v44 = vsel %vm246_vm2, %v801_v48, %v354_v53 }
 0x17d   :  { %v331_v61 = vpop.permute.xlu1 %330  ;;  %621 = vmatprep.subr.bf16.mxu1 %v664_v37  ;;  %v622_v62 = vpack.c.bf16 %v370_v44, %v369_v43  ;;  %v371_v47 = vsel %vm246_vm2, %v805_v51, %v355_v58  ;;  %v375_v51 = vld [vmem:[%s906_s1] sm:$0xf] }
 0x17e   :  { %v356_v63 = vmul.f32 %v331_v61, %v260_v59  ;;  %v336_v1 = vpop.permute.xlu0 %335  ;;  %v376_v9 = vunpack.c.l.bf16 %v375_v51 }
 0x17f   :  { %v357_v2 = vmul.f32 %v336_v1, %v261_v0 }
 0x180   :  { %623 = vmatpush3.bf16.msra.mxu1 %v622_v62  ;;  %v372_v48 = vsel %vm246_vm2, %v807_v52, %v356_v63 }
 0x181   :  { %v341_v4 = vpop.permute.xlu1 %340  ;;  %624 = vmatprep.subr.bf16.mxu1 %v664_v37  ;;  %v625_v5 = vpack.c.bf16 %v372_v48, %v371_v47  ;;  %v373_v7 = vsel %vm246_vm2, %v811_v55, %v357_v2 }
 0x182   :  { %v358_v6 = vmul.f32 %v341_v4, %v262_v3 }
 0x184   :  { %626 = vmatpush3.bf16.msra.mxu1 %v625_v5  ;;  %v374_v8 = vsel %vm246_vm2, %v813_v56, %v358_v6 }
 0x185   :  { %627 = vmatprep.subr.bf16.mxu1 %v664_v37  ;;  %v628_v52 = vpack.c.bf16 %v374_v8, %v373_v7 }
 0x188   :  { %629 = vmatpush3.bf16.msra.mxu1 %v628_v52 }
 0x18b   :  { %596 = vmatmul.mubr.f32.vlgmr.msra.gmra.mrb[0].mxu1 %v376_v9 }
 0x25e   :  { %v444_v10 = vpop.f32.mrb[0].mxu1 }
 0x25f   :  { %v454_v11 = vadd.f32 1e-06, %v444_v10  ;;  %v597_v12 = vpop.f32.mrb[1].mxu1 }
 0x261   :  { %637 = vrcp.f32 %v454_v11 }
 0x26b   :  { %v638_v13 = vpop.eup %637 }
 0x26c   :  { %458 = vperm.xlu0 %635, %v638_v13  }
 0x2eb   :  { %v459_v55 = vpop.permute.xlu0 %458 }
 0x2ec   :  { %v461_v56 = vmul.f32 %v459_v55, %v444_v10 }
 0x2ee   :  { %462 = vst [vmem:[#allocation3] sm:$0xff] %v461_v56 }
 0x2ef   :  { %650 = shalt.err (!%p647_p4)
}
 0x2f0   :  { %s651_s7 = scalar_lea.hbm %s909_s4, 128 }
 0x2f1   :  { %p652_p5 = scmp.ne.s32.totalorder %s909_s4, %s651_s7  ;;  %p655_p6 = scmp.lt.u32.totalorder %s651_s7, %s909_s4 }
 0x2f3   :  { %p657_p7 = pnand %p655_p6, %p652_p5 }
 0x2f5   :  { %660 = shalt.err (!%p657_p7)
}
 0x2f6   :  { %472 = dma.vmem_to_hbm [thread:$0]  %s470_s30, 128, %s909_s4, [#allocation4]  }
 0x2f7   :  { %661 = dma.done.wait [#allocation4], 128  }
 0x2f8   :  { %662 = vsyncadd [#allocation4], 4294967168 }
 0x2f9   :  { %476 = vsyncpa [#allocation4], 1 }

</bundles_post_ra>
